<compile_context>
chip_gen: v7x
topology: tpu7x:2x2x1
jax: 0.10.0
libtpu: 0.0.40
codegen_flags: <defaults>
</compile_context>

<pallas_src>
import functools

import jax
import jax.numpy as jnp
from jax import lax
from jax.experimental import pallas as pl
from jax.experimental.pallas import tpu as pltpu


def _round_up(x, m):
    return (x + m - 1) // m * m


def _is_v5e():
    try:
        kind = jax.devices()[0].device_kind.lower()
    except Exception:  # pragma: no cover - defensive
        return False
    return ("v5 lite" in kind) or ("v5e" in kind) or ("v5lite" in kind)


def _pad_lane(d):
    """Pad a matmul contraction/output dim: >=128; 256-aligned on v6e/v7x MXUs."""
    if d <= 128:
        return 128
    return _round_up(d, 128 if _is_v5e() else 256)


def _pad_sublane(d):
    # bf16 packs 16 rows per sublane tile; keep all bf16 operands fully packed.
    return _round_up(d, 16)


def _hypergraph_kernel(num_hglayers, parallel_output, use_prop,
                       n_ref, x0_ref, h_ref, wf_ref, bf_ref, wl_ref, bl_ref,
                       out_ref):
    """All hot-path compute (matmuls, reductions, elementwise) lives here."""
    h_b = h_ref[...]                                    # [Np, Ep] bf16 (exact 0/1)
    np_, ep = h_b.shape

    # Transposed incidence built ONCE (hoisted out of the layer loop).
    h_t = h_b.T                                         # [Ep, Np] bf16

    # Degrees via bf16 MXU dots against ones (f32 accumulation -> exact for 0/1).
    ones_e = jnp.ones((ep, 1), jnp.bfloat16)
    ones_n = jnp.ones((np_, 1), jnp.bfloat16)
    inv_dv = 1.0 / jnp.maximum(
        jnp.dot(h_b, ones_e, preferred_element_type=jnp.float32), 1.0)   # [Np,1]
    inv_de = 1.0 / jnp.maximum(
        jnp.dot(h_t, ones_n, preferred_element_type=jnp.float32), 1.0)   # [Ep,1]

    if use_prop:
        # Loop-invariant propagation operator P = Dv^-1 H De^-1 H^T, built once.
        h_t_scaled = (h_t * inv_de).astype(jnp.bfloat16)                 # [Ep, Np]
        prop = jnp.dot(h_b, h_t_scaled,
                       preferred_element_type=jnp.float32) * inv_dv      # [Np, Np]
        prop_b = prop.astype(jnp.bfloat16)

    # --- featurizer: project raw node features into dim_h ---
    x = jnp.dot(x0_ref[...], wf_ref[...],
                preferred_element_type=jnp.float32) + bf_ref[...]        # [Np, Dh]

    # Hoist loop-invariant loads / broadcasts.
    wl = wl_ref[...]                                    # [Dh, Dh] bf16
    bl = jnp.broadcast_to(bl_ref[...], x.shape)         # [Np, Dh] f32

    acc = jnp.zeros_like(x)

    # --- shared-weight hypergraph conv layer applied num_hglayers times ---
    for _ in range(num_hglayers):
        xb = x.astype(jnp.bfloat16)
        if use_prop:
            agg = jnp.dot(prop_b, xb, preferred_element_type=jnp.float32)
        else:
            # Two-stage fallback: H kept as exact 0/1 on the MXU, normalizers
            # applied as f32 post-scales (VPU; hides under the MXU).
            m_e = jnp.dot(h_t, xb, preferred_element_type=jnp.float32) * inv_de
            agg = jnp.dot(h_b, m_e.astype(jnp.bfloat16),
                          preferred_element_type=jnp.float32) * inv_dv
        x = jax.nn.relu(
            jnp.dot(agg.astype(jnp.bfloat16), wl,
                    preferred_element_type=jnp.float32) + bl) + x
        acc = acc + x                                   # torch.stack(...).sum(0)

    output = acc if parallel_output else x

    # --- global_mean_pool over the REAL nodes (padded rows masked out) ---
    n_real = n_ref[0]
    node_idx = lax.broadcasted_iota(jnp.int32, (np_, 1), 0)               # [Np,1]
    valid = (node_idx < n_real).astype(jnp.float32)
    inv_n = 1.0 / n_real.astype(jnp.float32)
    out_ref[...] = jnp.sum(output * valid, axis=0, keepdims=True) * inv_n


def prepare_params(w_feat, b_feat, w_layer, b_layer):
    """Pad/cast the model weights ONCE (hoisted out of the per-call path)."""
    dim_in, dim_h = w_feat.shape
    di_pad = _pad_lane(dim_in)
    dh_pad = _pad_lane(dim_h)
    wf_p = jnp.zeros((di_pad, dh_pad), jnp.bfloat16).at[:dim_in, :dim_h].set(
        w_feat.astype(jnp.bfloat16))
    bf_p = jnp.zeros((1, dh_pad), jnp.float32).at[:, :dim_h].set(
        jnp.reshape(b_feat, (1, dim_h)).astype(jnp.float32))
    wl_p = jnp.zeros((dh_pad, dh_pad), jnp.bfloat16).at[:dim_h, :dim_h].set(
        w_layer.astype(jnp.bfloat16))
    bl_p = jnp.zeros((1, dh_pad), jnp.float32).at[:, :dim_h].set(
        jnp.reshape(b_layer, (1, dim_h)).astype(jnp.float32))
    return {"wf": wf_p, "bf": bf_p, "wl": wl_p, "bl": bl_p}


@functools.partial(jax.jit,
                   static_argnames=("num_hglayers", "parallel_output", "dim_h"))
def hypergraph_model(x0, H, params, *, num_hglayers, parallel_output, dim_h):
    """Glue: per-graph zero-padding + dtype casts; all compute in Pallas."""
    n, dim_in = x0.shape
    n_edges = H.shape[1]
    di_pad = params["wf"].shape[0]
    dh_pad = params["wf"].shape[1]
    n_pad = _pad_sublane(n)            # bf16 sublane packing (multiple of 16)
    e_pad = _pad_lane(n_edges)         # lane dim of H

    # Zero-padding keeps the math exact: padded edges/features contribute 0,
    # padded node rows only affect the final mean (masked in-kernel).
    x0_p = jnp.zeros((n_pad, di_pad), jnp.bfloat16).at[:n, :dim_in].set(
        x0.astype(jnp.bfloat16))
    h_p = jnp.zeros((n_pad, e_pad), jnp.bfloat16).at[:n, :n_edges].set(
        H.astype(jnp.bfloat16))
    n_arr = jnp.full((1,), n, jnp.int32)

    # Precompute the dense propagation operator when it is cheap and fits VMEM.
    use_prop = (n_pad <= 2 * e_pad) and (n_pad * n_pad * 6 <= 16 * 2**20)

    # --- VMEM budget from the actual padded footprint (+50% headroom) ---
    in_bytes = ((x0_p.size + h_p.size + params["wf"].size + params["wl"].size) * 2
                + (params["bf"].size + params["bl"].size) * 4 + 4)
    tmp_bytes = n_pad * e_pad * 2                       # h_t
    if use_prop:
        tmp_bytes += n_pad * e_pad * 2                  # h_t_scaled
        tmp_bytes += n_pad * n_pad * 6                  # prop (f32 + bf16)
    else:
        tmp_bytes += e_pad * dh_pad * 4                 # m_e
    tmp_bytes += 3 * n_pad * dh_pad * 4                 # x, acc, bias broadcast
    vmem_limit = min(max(int((in_bytes + tmp_bytes) * 1.5), 16 * 2**20), 64 * 2**20)

    # --- cost estimate ---
    flops = 2 * n_pad * di_pad * dh_pad + 4 * n_pad * e_pad
    if use_prop:
        flops += 2 * n_pad * e_pad * n_pad
        flops += num_hglayers * (2 * n_pad * n_pad * dh_pad
                                 + 2 * n_pad * dh_pad * dh_pad)
    else:
        flops += num_hglayers * (4 * n_pad * e_pad * dh_pad
                                 + 2 * n_pad * dh_pad * dh_pad)
    bytes_accessed = in_bytes + dh_pad * 4

    kernel = functools.partial(_hypergraph_kernel, num_hglayers,
                               parallel_output, use_prop)
    vmem = pl.BlockSpec(memory_space=pltpu.MemorySpace.VMEM)
    smem = pl.BlockSpec(memory_space=pltpu.MemorySpace.SMEM)

    out = pl.pallas_call(
        kernel,
        out_shape=jax.ShapeDtypeStruct((1, dh_pad), jnp.float32),
        in_specs=[smem, vmem, vmem, vmem, vmem, vmem, vmem],
        out_specs=vmem,
        compiler_params=pltpu.CompilerParams(vmem_limit_bytes=vmem_limit),
        cost_estimate=pl.CostEstimate(flops=flops, transcendentals=0,
                                      bytes_accessed=bytes_accessed),
    )(n_arr, x0_p, h_p, params["wf"], params["bf"], params["wl"], params["bl"])

    return out[:, :dim_h]


if __name__ == "__main__":
    # small shapes consistent with the forward: a graph of 16 nodes, 8 hyperedges
    N, E, dim_in, dim_h = 16, 8, 8, 32
    num_hglayers, parallel_output = 3, True

    key = jax.random.PRNGKey(0)
    k1, k2, k3, k4, k5, k6 = jax.random.split(key, 6)

    x0 = jax.random.normal(k1, (N, dim_in), jnp.float32)                  # node feats
    H = (jax.random.uniform(k2, (N, E)) < 0.4).astype(jnp.float32)        # incidence

    # deterministic synthetic parameters (shapes from cfg.dim_h etc.)
    w_feat = jax.random.normal(k3, (dim_in, dim_h), jnp.float32) * 0.1
    b_feat = jax.random.normal(k4, (1, dim_h), jnp.float32) * 0.01
    w_layer = jax.random.normal(k5, (dim_h, dim_h), jnp.float32) * 0.1
    b_layer = jax.random.normal(k6, (1, dim_h), jnp.float32) * 0.01

    # weight padding/casting done once, outside the per-call path
    params = prepare_params(w_feat, b_feat, w_layer, b_layer)
    params = jax.tree_util.tree_map(jax.block_until_ready, params)

    out = hypergraph_model(x0, H, params,
                           num_hglayers=num_hglayers,
                           parallel_output=parallel_output,
                           dim_h=dim_h)
    out = jax.block_until_ready(out)
    assert out.shape == (1, dim_h) and out.dtype == jnp.float32
    print("KERNEL_OK")
</pallas_src>

<mosaic_0001>
module attributes {stable_mosaic.version = 11 : i64} {
  func.func @_hypergraph_kernel(%arg0: memref<1xi32, #tpu.memory_space<smem>>, %arg1: memref<16x128xbf16, #tpu.memory_space<vmem>>, %arg2: memref<16x128xbf16, #tpu.memory_space<vmem>>, %arg3: memref<128x128xbf16, #tpu.memory_space<vmem>>, %arg4: memref<1x128xf32, #tpu.memory_space<vmem>>, %arg5: memref<128x128xbf16, #tpu.memory_space<vmem>>, %arg6: memref<1x128xf32, #tpu.memory_space<vmem>>, %arg7: memref<1x128xf32, #tpu.memory_space<vmem>>) attributes {dimension_semantics = [], scalar_prefetch = 0 : i64, scratch_operands = 0 : i64, tpu.core_type = #tpu.core_type<tc>} {
    %c0 = arith.constant 0 : index
    %c0_0 = arith.constant 0 : index
    %0 = vector.load %arg2[%c0, %c0_0] : memref<16x128xbf16, #tpu.memory_space<vmem>>, vector<16x128xbf16>
    %1 = tpu.transpose %0, [1, 0] : vector<16x128xbf16> -> vector<128x16xbf16>
    %cst = arith.constant 1.000000e+00 : bf16
    %2 = vector.broadcast %cst : bf16 to vector<128x1xbf16>
    %cst_1 = arith.constant 1.000000e+00 : bf16
    %3 = vector.broadcast %cst_1 : bf16 to vector<16x1xbf16>
    %cst_2 = arith.constant dense<0.000000e+00> : vector<16x1xf32>
    %4 = tpu.matmul %0, %2, %cst_2 {dimension_numbers = #tpu.dot_dimension_numbers<[1], [0], [0], [1], [0, 0, 1, 1], [], []>} : vector<16x128xbf16>, vector<128x1xbf16>, vector<16x1xf32> -> vector<16x1xf32>
    %cst_3 = arith.constant 1.000000e+00 : f32
    %5 = vector.broadcast %cst_3 : f32 to vector<16x1xf32>
    %6 = arith.maximumf %4, %5 : vector<16x1xf32>
    %cst_4 = arith.constant 1.000000e+00 : f32
    %7 = vector.broadcast %cst_4 : f32 to vector<16x1xf32>
    %8 = arith.divf %7, %6 : vector<16x1xf32>
    %cst_5 = arith.constant dense<0.000000e+00> : vector<128x1xf32>
    %9 = tpu.matmul %1, %3, %cst_5 {dimension_numbers = #tpu.dot_dimension_numbers<[1], [0], [0], [1], [0, 0, 1, 1], [], []>} : vector<128x16xbf16>, vector<16x1xbf16>, vector<128x1xf32> -> vector<128x1xf32>
    %cst_6 = arith.constant 1.000000e+00 : f32
    %10 = vector.broadcast %cst_6 : f32 to vector<128x1xf32>
    %11 = arith.maximumf %9, %10 : vector<128x1xf32>
    %cst_7 = arith.constant 1.000000e+00 : f32
    %12 = vector.broadcast %cst_7 : f32 to vector<128x1xf32>
    %13 = arith.divf %12, %11 : vector<128x1xf32>
    %14 = arith.extf %1 : vector<128x16xbf16> to vector<128x16xf32>
    %15 = vector.broadcast %13 : vector<128x1xf32> to vector<128x16xf32>
    %16 = arith.mulf %14, %15 : vector<128x16xf32>
    %17 = arith.truncf %16 : vector<128x16xf32> to vector<128x16xbf16>
    %cst_8 = arith.constant dense<0.000000e+00> : vector<16x16xf32>
    %18 = tpu.matmul %0, %17, %cst_8 {dimension_numbers = #tpu.dot_dimension_numbers<[1], [0], [0], [1], [0, 0, 1, 1], [], []>} : vector<16x128xbf16>, vector<128x16xbf16>, vector<16x16xf32> -> vector<16x16xf32>
    %19 = vector.broadcast %8 : vector<16x1xf32> to vector<16x16xf32>
    %20 = arith.mulf %18, %19 : vector<16x16xf32>
    %21 = arith.truncf %20 : vector<16x16xf32> to vector<16x16xbf16>
    %c0_9 = arith.constant 0 : index
    %c0_10 = arith.constant 0 : index
    %22 = vector.load %arg1[%c0_9, %c0_10] : memref<16x128xbf16, #tpu.memory_space<vmem>>, vector<16x128xbf16>
    %c0_11 = arith.constant 0 : index
    %c0_12 = arith.constant 0 : index
    %23 = vector.load %arg3[%c0_11, %c0_12] : memref<128x128xbf16, #tpu.memory_space<vmem>>, vector<128x128xbf16>
    %cst_13 = arith.constant dense<0.000000e+00> : vector<16x128xf32>
    %24 = tpu.matmul %22, %23, %cst_13 {dimension_numbers = #tpu.dot_dimension_numbers<[1], [0], [0], [1], [0, 0, 1, 1], [], []>} : vector<16x128xbf16>, vector<128x128xbf16>, vector<16x128xf32> -> vector<16x128xf32>
    %c0_14 = arith.constant 0 : index
    %c0_15 = arith.constant 0 : index
    %25 = vector.load %arg4[%c0_14, %c0_15] : memref<1x128xf32, #tpu.memory_space<vmem>>, vector<1x128xf32>
    %26 = vector.broadcast %25 : vector<1x128xf32> to vector<16x128xf32>
    %27 = arith.addf %24, %26 : vector<16x128xf32>
    %c0_16 = arith.constant 0 : index
    %c0_17 = arith.constant 0 : index
    %28 = vector.load %arg5[%c0_16, %c0_17] : memref<128x128xbf16, #tpu.memory_space<vmem>>, vector<128x128xbf16>
    %c0_18 = arith.constant 0 : index
    %c0_19 = arith.constant 0 : index
    %29 = vector.load %arg6[%c0_18, %c0_19] : memref<1x128xf32, #tpu.memory_space<vmem>>, vector<1x128xf32>
    %30 = vector.shape_cast %29 : vector<1x128xf32> to vector<1x128xf32>
    %31 = vector.broadcast %30 : vector<1x128xf32> to vector<16x128xf32>
    %cst_20 = arith.constant 0.000000e+00 : f32
    %32 = vector.broadcast %cst_20 : f32 to vector<16x128xf32>
    %33 = arith.truncf %27 : vector<16x128xf32> to vector<16x128xbf16>
    %cst_21 = arith.constant dense<0.000000e+00> : vector<16x128xf32>
    %34 = tpu.matmul %21, %33, %cst_21 {dimension_numbers = #tpu.dot_dimension_numbers<[1], [0], [0], [1], [0, 0, 1, 1], [], []>} : vector<16x16xbf16>, vector<16x128xbf16>, vector<16x128xf32> -> vector<16x128xf32>
    %35 = arith.truncf %34 : vector<16x128xf32> to vector<16x128xbf16>
    %cst_22 = arith.constant dense<0.000000e+00> : vector<16x128xf32>
    %36 = tpu.matmul %35, %28, %cst_22 {dimension_numbers = #tpu.dot_dimension_numbers<[1], [0], [0], [1], [0, 0, 1, 1], [], []>} : vector<16x128xbf16>, vector<128x128xbf16>, vector<16x128xf32> -> vector<16x128xf32>
    %37 = arith.addf %36, %31 : vector<16x128xf32>
    %cst_23 = arith.constant 0.000000e+00 : f32
    %38 = vector.broadcast %cst_23 : f32 to vector<16x128xf32>
    %39 = arith.maximumf %37, %38 : vector<16x128xf32>
    %40 = arith.addf %39, %27 : vector<16x128xf32>
    %41 = arith.addf %32, %40 : vector<16x128xf32>
    %42 = arith.truncf %40 : vector<16x128xf32> to vector<16x128xbf16>
    %cst_24 = arith.constant dense<0.000000e+00> : vector<16x128xf32>
    %43 = tpu.matmul %21, %42, %cst_24 {dimension_numbers = #tpu.dot_dimension_numbers<[1], [0], [0], [1], [0, 0, 1, 1], [], []>} : vector<16x16xbf16>, vector<16x128xbf16>, vector<16x128xf32> -> vector<16x128xf32>
    %44 = arith.truncf %43 : vector<16x128xf32> to vector<16x128xbf16>
    %cst_25 = arith.constant dense<0.000000e+00> : vector<16x128xf32>
    %45 = tpu.matmul %44, %28, %cst_25 {dimension_numbers = #tpu.dot_dimension_numbers<[1], [0], [0], [1], [0, 0, 1, 1], [], []>} : vector<16x128xbf16>, vector<128x128xbf16>, vector<16x128xf32> -> vector<16x128xf32>
    %46 = arith.addf %45, %31 : vector<16x128xf32>
    %cst_26 = arith.constant 0.000000e+00 : f32
    %47 = vector.broadcast %cst_26 : f32 to vector<16x128xf32>
    %48 = arith.maximumf %46, %47 : vector<16x128xf32>
    %49 = arith.addf %48, %40 : vector<16x128xf32>
    %50 = arith.addf %41, %49 : vector<16x128xf32>
    %51 = arith.truncf %49 : vector<16x128xf32> to vector<16x128xbf16>
    %cst_27 = arith.constant dense<0.000000e+00> : vector<16x128xf32>
    %52 = tpu.matmul %21, %51, %cst_27 {dimension_numbers = #tpu.dot_dimension_numbers<[1], [0], [0], [1], [0, 0, 1, 1], [], []>} : vector<16x16xbf16>, vector<16x128xbf16>, vector<16x128xf32> -> vector<16x128xf32>
    %53 = arith.truncf %52 : vector<16x128xf32> to vector<16x128xbf16>
    %cst_28 = arith.constant dense<0.000000e+00> : vector<16x128xf32>
    %54 = tpu.matmul %53, %28, %cst_28 {dimension_numbers = #tpu.dot_dimension_numbers<[1], [0], [0], [1], [0, 0, 1, 1], [], []>} : vector<16x128xbf16>, vector<128x128xbf16>, vector<16x128xf32> -> vector<16x128xf32>
    %55 = arith.addf %54, %31 : vector<16x128xf32>
    %cst_29 = arith.constant 0.000000e+00 : f32
    %56 = vector.broadcast %cst_29 : f32 to vector<16x128xf32>
    %57 = arith.maximumf %55, %56 : vector<16x128xf32>
    %58 = arith.addf %57, %49 : vector<16x128xf32>
    %59 = arith.addf %50, %58 : vector<16x128xf32>
    %c0_30 = arith.constant 0 : index
    %60 = memref.load %arg0[%c0_30] : memref<1xi32, #tpu.memory_space<smem>>
    %61 = tpu.iota {dimensions = array<i32: 0>} : vector<16x1xi32>
    %62 = vector.broadcast %60 : i32 to vector<16x1xi32>
    %63 = arith.cmpi slt, %61, %62 : vector<16x1xi32>
    %64 = arith.extui %63 : vector<16x1xi1> to vector<16x1xi32>
    %65 = arith.sitofp %64 : vector<16x1xi32> to vector<16x1xf32>
    %66 = arith.sitofp %60 : i32 to f32
    %cst_31 = arith.constant 1.000000e+00 : f32
    %67 = arith.divf %cst_31, %66 : f32
    %68 = vector.broadcast %65 : vector<16x1xf32> to vector<16x128xf32>
    %69 = arith.mulf %59, %68 : vector<16x128xf32>
    %cst_32 = arith.constant dense<0.000000e+00> : vector<128xf32>
    %70 = vector.multi_reduction <add>, %69, %cst_32 [0] : vector<16x128xf32> to vector<128xf32>
    %71 = vector.shape_cast %70 : vector<128xf32> to vector<1x128xf32>
    %72 = vector.broadcast %67 : f32 to vector<1x128xf32>
    %73 = arith.mulf %71, %72 : vector<1x128xf32>
    %c0_33 = arith.constant 0 : index
    %c0_34 = arith.constant 0 : index
    %74 = vector.load %arg7[%c0_33, %c0_34] : memref<1x128xf32, #tpu.memory_space<vmem>>, vector<1x128xf32>
    tpu.vector_store %arg7[%c0_33, %c0_34], %73 {strides = array<i32>} : memref<1x128xf32, #tpu.memory_space<vmem>>, vector<1x128xf32>,
    return
  }
}

</mosaic_0001>

<bundles_post_ra>
// kernel: hypergraph_model.1
= control target key start
LH: loop header
LB: loop body
LE: loop exit
PB: predicated region body
PF: predicated region fallthrough
CT: control target
= control target key end

     0   :  { %13 = vsyncpa [#allocation4], 0  ;;  %s1664_s0 = inlined_call_operand.<no memory space> [shape: s32[1], index: 0, kind: input, shape index: {}]   ;;  %s1665_s1 = inlined_call_operand.vmem [shape: bf16[16,128], index: 1, kind: input, shape index: {}]   ;;  %s1666_s2 = inlined_call_operand.vmem [shape: bf16[16,128], index: 2, kind: input, shape index: {}]   ;;  %s1667_s3 = inlined_call_operand.vmem [shape: bf16[128,128], index: 3, kind: input, shape index: {}]   ;;  %s1668_s4 = inlined_call_operand.vmem [shape: f32[1,128], index: 4, kind: input, shape index: {}]   ;;  %s1669_s5 = inlined_call_operand.vmem [shape: bf16[128,128], index: 5, kind: input, shape index: {}]   ;;  %s1670_s6 = inlined_call_operand.hbm [shape: f32[1,128], index: 6, kind: input, shape index: {}]   ;;  %s1671_s7 = inlined_call_operand.hbm [shape: f32[1,128], index: 7, kind: output, shape index: {}]  }
   0x1   :  { %14 = vsyncpa [#allocation5], 0  ;;  %s1335_s24 = smov [#allocation3]   ;;  %s1287_s28 = scalar_lea.hbm %s1670_s6, 16 }
   0x2   :  { %s33_s25 = sshll.u32 %s1335_s24, 4  ;;  %p1288_p0 = scmp.ne.s32.totalorder %s1670_s6, %s1287_s28  ;;  %s34_s25 = int_to_ptr.vmem [resolvable:$true] %s33_s25 }
   0x3   :  { %p1291_p1 = scmp.lt.u32.totalorder %s1287_s28, %s1670_s6 }
   0x5   :  { %p1293_p2 = pnand %p1291_p1, %p1288_p0 }
   0x7   :  { %1296 = shalt.err (!%p1293_p2)
}
   0x8   :  { %s1297_s10 = scalar_lea.vmem %s34_s25, 16  ;;  %s1301_s11 = scalar_lea.vmem %s34_s25, 32 }
   0x9   :  { %p1298_p3 = scmp.ne.s32.totalorder %s34_s25, %s1297_s10  ;;  %p1302_p4 = scmp.lt.s32.totalorder %s34_s25, %s34_s25 }
   0xa   :  { %p1303_p5 = scmp.lt.s32.totalorder %s1301_s11, %s1297_s10 }
   0xc   :  { %p1304_p6 = por %p1303_p5, %p1302_p4 }
   0xe   :  { %p1305_p7 = pnand %p1304_p6, %p1298_p3 }
  0x10   :  { %1308 = shalt.err (!%p1305_p7)
}
  0x11   :  { %36 = dma.hbm_to_vmem [thread:$0]  %s1670_s6, 16, %s34_s25, [#allocation4]  }
  0x12   :  { %1331 = dma.done.wait [#allocation4], 16  }
  0x13   :  { %1332 = vsyncadd [#allocation4], 4294967280  ;;  %v1336_v0 = vmov 0.0   ;;  %vm1337_vm0 = vmmov 0   ;;  %v1338_v1 = vmov 1065369472   ;;  %s932_s23 = scvt.s32.f32 %s1664_s0 }
  0x14   :  { %1065 = vmatprep.subr.bf16.mxu0 %v1336_v0  ;;  %1081 = vmatprep.mubr.msk.bf16.mxu0 %vm1337_vm0, %v1336_v0  ;;  %v1403_v2 = vld [vmem:[%s1666_s2] sm:$0xff]   ;;  %vm113_vm1 = vcmask 130048   ;;  %v1339_v11 = vmov 0   ;;  %v1233_v53 = vld [vmem:[%s1667_s3 + $0x8] sm:$0xff]   ;;  %v1234_v57 = vld [vmem:[%s1667_s3 + $0x10] sm:$0xff]   ;;  %s1340_s26 = smov [#allocation6]  }
  0x15   :  { %1066 = vmatpush3.bf16.msra.mxu0 %v1338_v1  ;;  %1103 = vmatprep.subr.bf16.mxu1 %v1336_v0  ;;  %v1232_v49 = vld [vmem:[%s1667_s3] sm:$0xff]   ;;  %v1235_v61 = vld [vmem:[%s1667_s3 + $0x18] sm:$0xff]   ;;  %s954_s27 = sshll.u32 %s1340_s26, 4  ;;  %s955_s27 = int_to_ptr.vmem [resolvable:$true] %s954_s27 }
  0x16   :  { %1067 = vmatprep.subr.bf16.mxu0 %v1336_v0  ;;  %1119 = vmatprep.mubr.msk.bf16.mxu1 %vm1337_vm0, %v1336_v0  ;;  %s1309_s28 = scalar_lea.vmem %s955_s27, 16  ;;  %s1313_s29 = scalar_lea.vmem %s955_s27, 32 }
  0x17   :  { %50 = vxpose.xlu0.c.b16.start.end [1/1] (short) %v1403_v2, 128  ;;  %1230 = vset.pattern.permute.xlu1 %v1339_v11  ;;  %p1310_p8 = scmp.ne.s32.totalorder %s955_s27, %s1309_s28  ;;  %p1314_p9 = scmp.lt.s32.totalorder %s955_s27, %s955_s27 }
  0x18   :  { %p1315_p10 = scmp.lt.s32.totalorder %s1313_s29, %s1309_s28 }
  0x19   :  { %1068 = vmatpush3.bf16.msra.mxu0 %v1338_v1 }
  0x1a   :  { %1069 = vmatprep.subr.bf16.mxu0 %v1336_v0  ;;  %p1316_p11 = por %p1315_p10, %p1314_p9 }
  0x1c   :  { %p1317_p12 = pnand %p1316_p11, %p1310_p8 }
  0x1d   :  { %1070 = vmatpush3.bf16.msra.mxu0 %v1338_v1 }
  0x1e   :  { %1071 = vmatprep.subr.bf16.mxu0 %v1336_v0 }
  0x20   :  { %1229 = vset.pattern.permute.xlu0 %v1339_v11  ;;  %v1236_v11 = vld [vmem:[%s1667_s3 + $0x20] sm:$0xff]  }
  0x21   :  { %1072 = vmatpush3.bf16.msra.mxu0 %v1338_v1 }
  0x22   :  { %1073 = vmatprep.subr.bf16.mxu0 %v1336_v0 }
  0x25   :  { %1074 = vmatpush3.bf16.msra.mxu0 %v1338_v1 }
  0x26   :  { %1075 = vmatprep.subr.bf16.mxu0 %v1336_v0 }
  0x29   :  { %1076 = vmatpush3.bf16.msra.mxu0 %v1338_v1 }
  0x2a   :  { %1077 = vmatprep.subr.bf16.mxu0 %v1336_v0 }
  0x2d   :  { %1078 = vmatpush3.bf16.msra.mxu0 %v1338_v1 }
  0x2e   :  { %1079 = vmatprep.subr.bf16.mxu0 %v1336_v0 }
  0x31   :  { %1080 = vmatpush3.bf16.msra.mxu0 %v1338_v1 }
  0x32   :  { %1085 = vmatprep.subr.bf16.mxu0 %v1338_v1 }
  0x34   :  { %1082 = vmatmul.mubr.bf16.vlgmr.msra.gmra.mrb[0].mxu0 %v1403_v2 }
  0x35   :  { %1086 = vmatpush3.bf16.msra.mxu0 %v1338_v1 }
  0x36   :  { %1123 = vmatprep.subr.bf16.mxu0 %v1336_v0 }
  0x7d   :  { %v1414_v3 = vpop.trf.xlu0 }
  0x7e   :  { %1087 = vmatprep.mubr.msk.bf16.mxu0 %vm113_vm1, %v1414_v3 }
  0x81   :  { %v1418_v4 = vpop.trf.xlu0 }
  0x82   :  { %1088 = vmatmul.mubr.msk.bf16.vlgmr.msra.gmra.mrb[4].mxu0 %vm113_vm1, %v1418_v4 }
  0x83   :  { %1124 = vmatpush3.bf16.msra.mxu0 %v1232_v49 }
  0x84   :  { %1125 = vmatprep.subr.bf16.mxu0 %v1336_v0 }
  0x85   :  { %v1422_v5 = vpop.trf.xlu0 }
  0x86   :  { %1091 = vmatprep.mubr.msk.bf16.mxu0 %vm113_vm1, %v1422_v5 }
  0x87   :  { %1126 = vmatpush3.bf16.msra.mxu0 %v1233_v53 }
  0x88   :  { %1127 = vmatprep.subr.bf16.mxu0 %v1336_v0 }
  0x89   :  { %v1426_v6 = vpop.trf.xlu0 }
  0x8a   :  { %1092 = vmatmul.mubr.msk.bf16.gmra.mrb[8].mxu0 %vm113_vm1, %v1426_v6 }
  0x8b   :  { %1128 = vmatpush3.bf16.msra.mxu0 %v1234_v57 }
  0x8c   :  { %1129 = vmatprep.subr.bf16.mxu0 %v1336_v0 }
  0x8d   :  { %v1430_v7 = vpop.trf.xlu0 }
  0x8e   :  { %1095 = vmatprep.mubr.msk.bf16.mxu0 %vm113_vm1, %v1430_v7 }
  0x8f   :  { %1130 = vmatpush3.bf16.msra.mxu0 %v1235_v61 }
  0x90   :  { %1131 = vmatprep.subr.bf16.mxu0 %v1336_v0 }
  0x91   :  { %v1434_v8 = vpop.trf.xlu0 }
  0x92   :  { %1096 = vmatmul.mubr.msk.bf16.gmra.mrb[12].mxu0 %vm113_vm1, %v1434_v8 }
  0x93   :  { %1132 = vmatpush3.bf16.msra.mxu0 %v1236_v11 }
  0x94   :  { %1133 = vmatprep.subr.bf16.mxu0 %v1336_v0 }
  0x95   :  { %v1438_v9 = vpop.trf.xlu0 }
  0x96   :  { %1099 = vmatprep.mubr.msk.bf16.mxu0 %vm113_vm1, %v1438_v9  ;;  %v295_v61 = vunpack.c.l.bf16 %v1438_v9 }
  0x99   :  { %v1442_v10 = vpop.trf.xlu0 }
  0x9a   :  { %1100 = vmatmul.mubr.msk.bf16.gmra.mrb[16].mxu0 %vm113_vm1, %v1442_v10 }
  0x9b   :  { %1139 = vmatprep.mubr.msk.bf16.mxu0 %vm1337_vm0, %v1336_v0 }
 0x107   :  { %v1448_v12 = vpop.f32.mrb[0].mxu0 }
 0x108   :  { %v1083_v13 = vpop.f32.mrb[1].mxu0  ;;  %v107_v51 = vmax.f32 %v1448_v12, 1.0 }
 0x109   :  { %v1450_v14 = vpop.f32.mrb[2].mxu0 }
 0x10a   :  { %v1084_v15 = vpop.f32.mrb[3].mxu0 }
 0x10b   :  { %v1237_v15 = vld [vmem:[%s1667_s3 + $0x28] sm:$0xff]  }
 0x10c   :  { %1134 = vmatpush3.bf16.msra.mxu0 %v1237_v15  ;;  %v298_v15 = vunpack.c.h.bf16 %v1442_v10 }
 0x10d   :  { %1135 = vmatprep.subr.bf16.mxu0 %v1336_v0 }
 0x155   :  { %v1089_v16 = vpop.f32.mrb[4].mxu0 }
 0x156   :  { %v237_v17 = vmax.f32 %v1089_v16, 1.0  ;;  %v172_v18 = vpop.f32.mrb[5].mxu0  ;;  %v108_v16 = vmax.f32 %v1450_v14, 1.0  ;;  %v1239_v14 = vld [vmem:[%s1667_s3 + $0x38] sm:$0xff]  }
 0x157   :  { %v235_v19 = vmax.f32 %v172_v18, 1.0  ;;  %v1090_v20 = vpop.f32.mrb[6].mxu0  ;;  %v1238_v18 = vld [vmem:[%s1667_s3 + $0x30] sm:$0xff]  }
 0x158   :  { %1249 = vrcp.f32 %v237_v17  ;;  %v238_v21 = vmax.f32 %v1090_v20, 1.0  ;;  %v175_v22 = vpop.f32.mrb[7].mxu0  ;;  %1136 = vmatpush3.bf16.msra.mxu0 %v1238_v18 }
 0x159   :  { %1251 = vrcp.f32 %v235_v19  ;;  %v236_v23 = vmax.f32 %v175_v22, 1.0  ;;  %1137 = vmatprep.subr.bf16.mxu0 %v1336_v0 }
 0x15a   :  { %1253 = vrcp.f32 %v238_v21  ;;  %v1240_v21 = vld [vmem:[%s1665_s1] sm:$0xff]  }
 0x15b   :  { %1255 = vrcp.f32 %v236_v23 }
 0x15c   :  { %1138 = vmatpush3.bf16.msra.mxu0 %v1239_v14 }
 0x15d   :  { %v1093_v24 = vpop.f32.mrb[8].mxu0  ;;  %1169 = vmatprep.subr.bf16.mxu0 %v1336_v0 }
 0x15e   :  { %v241_v25 = vmax.f32 %v1093_v24, 1.0  ;;  %v188_v26 = vpop.f32.mrb[9].mxu0 }
 0x15f   :  { %v1094_v27 = vpop.f32.mrb[10].mxu0  ;;  %v239_v31 = vmax.f32 %v188_v26, 1.0  ;;  %1140 = vmatmul.mubr.bf16.vlgmr.msra.gmra.mrb[20].mxu0 %v1240_v21  ;;  %v283_v26 = vunpack.c.l.bf16 %v1414_v3 }
 0x160   :  { %v191_v28 = vpop.f32.mrb[11].mxu0  ;;  %1257 = vrcp.f32 %v241_v25  ;;  %v242_v36 = vmax.f32 %v1094_v27, 1.0  ;;  %1171 = vmatprep.mubr.msk.bf16.mxu0 %vm1337_vm0, %v1336_v0  ;;  %v284_v27 = vunpack.c.h.bf16 %v1414_v3 }
 0x161   :  { %1259 = vrcp.f32 %v239_v31  ;;  %v240_v40 = vmax.f32 %v191_v28, 1.0 }
 0x162   :  { %v1250_v29 = vpop.eup %1249  ;;  %1261 = vrcp.f32 %v242_v36 }
 0x163   :  { %v1252_v30 = vpop.eup %1251  ;;  %311 = vperm.xlu1 %1230, %v1250_v29   ;;  %1263 = vrcp.f32 %v240_v40  ;;  %v288_v40 = vunpack.c.h.bf16 %v1422_v5 }
 0x164   :  { %301 = vperm.xlu0 %1229, %v1252_v30   ;;  %v1254_v33 = vpop.eup %1253  ;;  %v286_v30 = vunpack.c.h.bf16 %v1418_v4 }
 0x165   :  { %v1097_v32 = vpop.f32.mrb[12].mxu0  ;;  %v1256_v38 = vpop.eup %1255 }
 0x166   :  { %v204_v34 = vpop.f32.mrb[13].mxu0  ;;  %v245_v42 = vmax.f32 %v1097_v32, 1.0  ;;  %v285_v32 = vunpack.c.l.bf16 %v1418_v4  ;;  %v290_v4 = vunpack.c.h.bf16 %v1426_v6 }
 0x167   :  { %316 = vperm.xlu1 %1230, %v1254_v33   ;;  %v1098_v35 = vpop.f32.mrb[14].mxu0  ;;  %v243_v50 = vmax.f32 %v204_v34, 1.0 }
 0x168   :  { %v207_v37 = vpop.f32.mrb[15].mxu0  ;;  %v246_v59 = vmax.f32 %v1098_v35, 1.0 }
 0x169   :  { %v244_v54 = vmax.f32 %v207_v37, 1.0 }
 0x16a   :  { %v1258_v39 = vpop.eup %1257 }
 0x16b   :  { %306 = vperm.xlu1 %1230, %v1256_v38   ;;  %v1260_v48 = vpop.eup %1259 }
 0x16c   :  { %v1262_v52 = vpop.eup %1261 }
 0x16d   :  { %v1101_v41 = vpop.f32.mrb[16].mxu0  ;;  %v1264_v55 = vpop.eup %1263 }
 0x16e   :  { %v220_v43 = vpop.f32.mrb[17].mxu0  ;;  %v249_v44 = vmax.f32 %v1101_v41, 1.0 }
 0x16f   :  { %v247_v45 = vmax.f32 %v220_v43, 1.0  ;;  %331 = vperm.xlu1 %1230, %v1258_v39   ;;  %v1102_v46 = vpop.f32.mrb[18].mxu0  ;;  %v287_v39 = vunpack.c.l.bf16 %v1422_v5  ;;  %v291_v5 = vunpack.c.l.bf16 %v1430_v7 }
 0x170   :  { %v223_v47 = vpop.f32.mrb[19].mxu0  ;;  %v250_v12 = vmax.f32 %v1102_v46, 1.0 }
 0x171   :  { %1265 = vrcp.f32 %v247_v45  ;;  %v248_v62 = vmax.f32 %v223_v47, 1.0 }
 0x172   :  { %1267 = vrcp.f32 %v245_v42 }
 0x173   :  { %1269 = vrcp.f32 %v249_v44  ;;  %321 = vperm.xlu1 %1230, %v1260_v48   ;;  %v289_v44 = vunpack.c.l.bf16 %v1426_v6  ;;  %v293_v6 = vunpack.c.l.bf16 %v1434_v8 }
 0x174   :  { %1271 = vrcp.f32 %v243_v50 }
 0x175   :  { %1273 = vrcp.f32 %v107_v51  ;;  %v292_v51 = vunpack.c.h.bf16 %v1430_v7  ;;  %v296_v7 = vunpack.c.h.bf16 %v1438_v9  ;;  %v972_v9 = vld [vmem:[%s1668_s4] ss:$0 sm:$0xff] }
 0x176   :  { %1275 = vrcp.f32 %v244_v54 }
 0x177   :  { %336 = vperm.xlu1 %1230, %v1262_v52   ;;  %1277 = vrcp.f32 %v246_v59 }
 0x178   :  { %1279 = vrcp.f32 %v248_v62 }
 0x179   :  { %1281 = vrcp.f32 %v250_v12 }
 0x17a   :  { %1283 = vrcp.f32 %v108_v16 }
 0x17b   :  { %v1266_v56 = vpop.eup %1265  ;;  %326 = vperm.xlu1 %1230, %v1264_v55  }
 0x17c   :  { %v1268_v58 = vpop.eup %1267  ;;  %361 = vperm.xlu0 %1229, %v1266_v56   ;;  %v294_v56 = vunpack.c.h.bf16 %v1434_v8  ;;  %v297_v8 = vunpack.c.l.bf16 %v1442_v10 }
 0x17d   :  { %v1270_v60 = vpop.eup %1269 }
 0x17e   :  { %v1272_v63 = vpop.eup %1271 }
 0x17f   :  { %351 = vperm.xlu1 %1230, %v1268_v58   ;;  %v1274_v1 = vpop.eup %1273 }
 0x180   :  { %371 = vperm.xlu0 %1229, %v1270_v60   ;;  %v1276_v13 = vpop.eup %1275 }
 0x181   :  { %v1278_v17 = vpop.eup %1277 }
 0x182   :  { %v1280_v19 = vpop.eup %1279 }
 0x183   :  { %341 = vperm.xlu1 %1230, %v1272_v63   ;;  %v1282_v20 = vpop.eup %1281 }
 0x184   :  { %446 = vperm.xlu0 %1229, %v1274_v1   ;;  %v1284_v22 = vpop.eup %1283 }
 0x187   :  { %346 = vperm.xlu1 %1230, %v1276_v13  }
 0x18b   :  { %356 = vperm.xlu1 %1230, %v1278_v17  }
 0x18f   :  { %366 = vperm.xlu1 %1230, %v1280_v19  }
 0x193   :  { %376 = vperm.xlu1 %1230, %v1282_v20  }
 0x197   :  { %451 = vperm.xlu1 %1230, %v1284_v22  }
 0x1e2   :  { %v312_v23 = vpop.permute.xlu1 %311 }
 0x1e3   :  { %v302_v25 = vpop.permute.xlu0 %301  ;;  %v381_v36 = vmul.f32 %v312_v23, %v285_v32  ;;  %v1525_v32 = vld [vmem:[%s1669_s5] sm:$0xff]  }
 0x1e4   :  { %v379_v29 = vmul.f32 %v302_v25, %v283_v26 }
 0x1e6   :  { %v317_v24 = vpop.permute.xlu1 %316 }
 0x1e7   :  { %v382_v33 = vmul.f32 %v317_v24, %v286_v30 }
 0x1e9   :  { %v396_v37 = vpack.c.bf16 %v382_v33, %v381_v36  ;;  %v1551_v36 = vld [vmem:[%s1669_s5 + $0x18] sm:$0xff]  }
 0x1ea   :  { %v307_v28 = vpop.permute.xlu1 %306 }
 0x1eb   :  { %v380_v31 = vmul.f32 %v307_v28, %v284_v27 }
 0x1ed   :  { %v395_v34 = vpack.c.bf16 %v380_v31, %v379_v29 }
 0x1ee   :  { %v332_v35 = vpop.permute.xlu1 %331 }
 0x1ef   :  { %1104 = vmatpush3.bf16.msra.mxu1 %v395_v34  ;;  %v385_v48 = vmul.f32 %v332_v35, %v289_v44  ;;  %v1535_v34 = vld [vmem:[%s1669_s5 + $0x8] sm:$0xff]   ;;  %v1544_v35 = vld [vmem:[%s1669_s5 + $0x10] sm:$0xff]   ;;  %v1586_v44 = vld [vmem:[#allocation3] ss:$0 sm:$0xff] }
 0x1f0   :  { %1105 = vmatprep.subr.bf16.mxu1 %v1336_v0 }
 0x1f2   :  { %v322_v38 = vpop.permute.xlu1 %321 }
 0x1f3   :  { %1106 = vmatpush3.bf16.msra.mxu1 %v396_v37  ;;  %v383_v42 = vmul.f32 %v322_v38, %v287_v39  ;;  %v1558_v37 = vld [vmem:[%s1669_s5 + $0x20] sm:$0xff]   ;;  %v1565_v38 = vld [vmem:[%s1669_s5 + $0x28] sm:$0xff]   ;;  %v1580_v39 = vld [vmem:[%s1669_s5 + $0x38] sm:$0xff]  }
 0x1f4   :  { %1107 = vmatprep.subr.bf16.mxu1 %v1336_v0 }
 0x1f6   :  { %v337_v3 = vpop.permute.xlu1 %336 }
 0x1f7   :  { %v386_v45 = vmul.f32 %v337_v3, %v290_v4  ;;  %v1572_v3 = vld [vmem:[%s1669_s5 + $0x30] sm:$0xff]  }
 0x1f9   :  { %v398_v49 = vpack.c.bf16 %v386_v45, %v385_v48 }
 0x1fa   :  { %v327_v41 = vpop.permute.xlu1 %326 }
 0x1fb   :  { %v384_v43 = vmul.f32 %v327_v41, %v288_v40  ;;  %v362_v57 = vpop.permute.xlu0 %361 }
 0x1fc   :  { %v391_v1 = vmul.f32 %v362_v57, %v295_v61 }
 0x1fd   :  { %v397_v46 = vpack.c.bf16 %v384_v43, %v383_v42 }
 0x1fe   :  { %v352_v47 = vpop.permute.xlu1 %351 }
 0x1ff   :  { %1108 = vmatpush3.bf16.msra.mxu1 %v397_v46  ;;  %v389_v59 = vmul.f32 %v352_v47, %v293_v6  ;;  %v372_v12 = vpop.permute.xlu0 %371 }
 0x200   :  { %1109 = vmatprep.subr.bf16.mxu1 %v1336_v0  ;;  %v393_v17 = vmul.f32 %v372_v12, %v297_v8 }
 0x202   :  { %v342_v50 = vpop.permute.xlu1 %341 }
 0x203   :  { %1110 = vmatpush3.bf16.msra.mxu1 %v398_v49  ;;  %v387_v53 = vmul.f32 %v342_v50, %v291_v5  ;;  %v447_v26 = vpop.permute.xlu0 %446 }
 0x204   :  { %1111 = vmatprep.subr.bf16.mxu1 %v1336_v0 }
 0x206   :  { %v347_v52 = vpop.permute.xlu1 %346 }
 0x207   :  { %v388_v54 = vmul.f32 %v347_v52, %v292_v51 }
 0x209   :  { %v399_v55 = vpack.c.bf16 %v388_v54, %v387_v53 }
 0x20a   :  { %v357_v58 = vpop.permute.xlu1 %356 }
 0x20b   :  { %v390_v60 = vmul.f32 %v357_v58, %v294_v56  ;;  %1112 = vmatpush3.bf16.msra.mxu1 %v399_v55 }
 0x20c   :  { %1113 = vmatprep.subr.bf16.mxu1 %v1336_v0 }
 0x20d   :  { %v400_v62 = vpack.c.bf16 %v390_v60, %v389_v59 }
 0x20e   :  { %v367_v63 = vpop.permute.xlu1 %366 }
 0x20f   :  { %v392_v11 = vmul.f32 %v367_v63, %v296_v7  ;;  %1114 = vmatpush3.bf16.msra.mxu1 %v400_v62 }
 0x210   :  { %1115 = vmatprep.subr.bf16.mxu1 %v1336_v0 }
 0x211   :  { %v401_v13 = vpack.c.bf16 %v392_v11, %v391_v1 }
 0x212   :  { %v377_v16 = vpop.permute.xlu1 %376 }
 0x213   :  { %v394_v18 = vmul.f32 %v377_v16, %v298_v15  ;;  %1116 = vmatpush3.bf16.msra.mxu1 %v401_v13  ;;  %v933_v15 = vstv %s932_s23 }
 0x214   :  { %1117 = vmatprep.subr.bf16.mxu1 %v1336_v0  ;;  %1285 = vrcp.f32 %v933_v15 }
 0x215   :  { %v402_v19 = vpack.c.bf16 %v394_v18, %v393_v17 }
 0x216   :  { %v452_v27 = vpop.permute.xlu1 %451 }
 0x217   :  { %1118 = vmatpush3.bf16.msra.mxu1 %v402_v19 }
 0x218   :  { %1143 = vmatprep.subr.bf16.mxu1 %v1336_v0 }
 0x21a   :  { %1120 = vmatmul.mubr.bf16.vlgmr.msra.gmra.mrb[0].mxu1 %v1403_v2 }
 0x21b   :  { %1145 = vmatprep.mubr.msk.bf16.mxu1 %vm1337_vm0, %v1336_v0 }
 0x21e   :  { %v1286_v16 = vpop.eup %1285 }
 0x21f   :  { %1221 = vpush %v1286_v16 }
 0x232   :  { %v570_v10 = vpop.f32.mrb[20].mxu0 }
 0x233   :  { %v571_v14 = vadd.f32 %v972_v9, %v570_v10  ;;  %v1141_v20 = vpop.f32.mrb[21].mxu0 }
 0x234   :  { %v573_v21 = vpop.f32.mrb[22].mxu0 }
 0x235   :  { %v574_v22 = vadd.f32 %v972_v9, %v573_v21  ;;  %v1142_v23 = vpop.f32.mrb[23].mxu0 }
 0x237   :  { %v600_v24 = vpack.c.bf16 %v574_v22, %v571_v14 }
 0x239   :  { %1144 = vmatpush3.bf16.msra.mxu1 %v600_v24 }
 0x23a   :  { %1149 = vmatprep.subr.bf16.mxu1 %v1336_v0 }
 0x2ed   :  { %v437_v25 = vpop.f32.mrb[0].mxu1 }
 0x2ee   :  { %v1121_v2 = vpop.f32.mrb[1].mxu1  ;;  %v454_v29 = vmul.f32 %v447_v26, %v437_v25  ;;  %v925_v25 = vstv %s1664_s0  ;;  %s1222_s0 = spop %1221 }
 0x2ef   :  { %v440_v28 = vpop.f32.mrb[2].mxu1 }
 0x2f0   :  { %v455_v30 = vmul.f32 %v452_v27, %v440_v28  ;;  %v1122_v31 = vpop.f32.mrb[3].mxu1 }
 0x2f2   :  { %v1527_v33 = vpack.c.bf16 %v455_v30, %v454_v29 }
 0x2f4   :  { %1146 = vmatmul.mubr.msk.bf16.vlgmr.msra.gmra.mrb[4].mxu1 %vm113_vm1, %v1527_v33 }
 0x2f5   :  { %1150 = vmatpush3.bf16.msra.mxu1 %v1525_v32  ;;  %1165 = vmatprep.mubr.msk.bf16.mxu1 %vm1337_vm0, %v1336_v0 }
 0x2f6   :  { %1151 = vmatprep.subr.bf16.mxu1 %v1336_v0 }
 0x2f9   :  { %1152 = vmatpush3.bf16.msra.mxu1 %v1535_v34 }
 0x2fa   :  { %1153 = vmatprep.subr.bf16.mxu1 %v1336_v0 }
 0x2fd   :  { %1154 = vmatpush3.bf16.msra.mxu1 %v1544_v35 }
 0x2fe   :  { %1155 = vmatprep.subr.bf16.mxu1 %v1336_v0 }
 0x301   :  { %1156 = vmatpush3.bf16.msra.mxu1 %v1551_v36 }
 0x302   :  { %1157 = vmatprep.subr.bf16.mxu1 %v1336_v0 }
 0x305   :  { %1158 = vmatpush3.bf16.msra.mxu1 %v1558_v37 }
 0x306   :  { %1159 = vmatprep.subr.bf16.mxu1 %v1336_v0 }
 0x309   :  { %1160 = vmatpush3.bf16.msra.mxu1 %v1565_v38 }
 0x30a   :  { %1161 = vmatprep.subr.bf16.mxu1 %v1336_v0 }
 0x30d   :  { %1162 = vmatpush3.bf16.msra.mxu1 %v1572_v3 }
 0x30e   :  { %1163 = vmatprep.subr.bf16.mxu1 %v1336_v0 }
 0x311   :  { %1164 = vmatpush3.bf16.msra.mxu1 %v1580_v39 }
 0x312   :  { %1195 = vmatprep.subr.bf16.mxu1 %v1336_v0 }
 0x3c7   :  { %v638_v40 = vpop.f32.mrb[4].mxu1 }
 0x3c8   :  { %v1147_v41 = vpop.f32.mrb[5].mxu1 }
 0x3c9   :  { %v641_v42 = vpop.f32.mrb[6].mxu1 }
 0x3ca   :  { %v645_v4 = vpack.c.bf16 %v641_v42, %v638_v40  ;;  %v1148_v43 = vpop.f32.mrb[7].mxu1 }
 0x3cc   :  { %1166 = vmatmul.mubr.bf16.vlgmr.msra.gmra.mrb[8].mxu1 %v645_v4 }
 0x3cd   :  { %1197 = vmatprep.mubr.msk.bf16.mxu1 %vm1337_vm0, %v1336_v0 }
 0x49f   :  { %v728_v45 = vpop.f32.mrb[8].mxu1 }
 0x4a0   :  { %v729_v46 = vadd.f32 %v1586_v44, %v728_v45  ;;  %v1167_v47 = vpop.f32.mrb[9].mxu1 }
 0x4a1   :  { %v731_v48 = vpop.f32.mrb[10].mxu1 }
 0x4a2   :  { %v735_v49 = vmax.f32 %v729_v46, 0.0  ;;  %v732_v50 = vadd.f32 %v1586_v44, %v731_v48  ;;  %v1168_v5 = vpop.f32.mrb[11].mxu1 }
 0x4a4   :  { %v736_v51 = vmax.f32 %v732_v50, 0.0  ;;  %v1590_v52 = vadd.f32 %v735_v49, %v571_v14  ;;  %v922_v14 = vlaneseq }
 0x4a6   :  { %v1592_v53 = vadd.f32 %v736_v51, %v574_v22  ;;  %v923_v20 = vshrl.u32 %v922_v14, 7 }
 0x4a8   :  { %v741_v54 = vpack.c.bf16 %v1592_v53, %v1590_v52  ;;  %v924_v24 = vadd.s32 8, %v923_v20  ;;  %vm926_vm2 = vcmp.lt.s32.totalorder %v923_v20, %v925_v25 }
 0x4aa   :  { %1170 = vmatpush3.bf16.msra.mxu0 %v741_v54  ;;  %vm927_vm3 = vcmp.lt.s32.totalorder %v924_v24, %v925_v25 }
 0x4ab   :  { %1175 = vmatprep.subr.bf16.mxu0 %v1336_v0 }
 0x4ad   :  { %1172 = vmatmul.mubr.msk.bf16.vlgmr.msra.gmra.mrb[24].mxu0 %vm113_vm1, %v1527_v33 }
 0x4ae   :  { %1176 = vmatpush3.bf16.msra.mxu0 %v1525_v32  ;;  %1191 = vmatprep.mubr.msk.bf16.mxu0 %vm1337_vm0, %v1336_v0 }
 0x4af   :  { %1177 = vmatprep.subr.bf16.mxu0 %v1336_v0 }
 0x4b2   :  { %1178 = vmatpush3.bf16.msra.mxu0 %v1535_v34 }
 0x4b3   :  { %1179 = vmatprep.subr.bf16.mxu0 %v1336_v0 }
 0x4b6   :  { %1180 = vmatpush3.bf16.msra.mxu0 %v1544_v35 }
 0x4b7   :  { %1181 = vmatprep.subr.bf16.mxu0 %v1336_v0 }
 0x4ba   :  { %1182 = vmatpush3.bf16.msra.mxu0 %v1551_v36 }
 0x4bb   :  { %1183 = vmatprep.subr.bf16.mxu0 %v1336_v0 }
 0x4be   :  { %1184 = vmatpush3.bf16.msra.mxu0 %v1558_v37 }
 0x4bf   :  { %1185 = vmatprep.subr.bf16.mxu0 %v1336_v0 }
 0x4c2   :  { %1186 = vmatpush3.bf16.msra.mxu0 %v1565_v38 }
 0x4c3   :  { %1187 = vmatprep.subr.bf16.mxu0 %v1336_v0 }
 0x4c6   :  { %1188 = vmatpush3.bf16.msra.mxu0 %v1572_v3 }
 0x4c7   :  { %1189 = vmatprep.subr.bf16.mxu0 %v1336_v0 }
 0x4ca   :  { %1190 = vmatpush3.bf16.msra.mxu0 %v1580_v39 }
 0x580   :  { %v776_v6 = vpop.f32.mrb[24].mxu0 }
 0x581   :  { %v1173_v55 = vpop.f32.mrb[25].mxu0 }
 0x582   :  { %v779_v56 = vpop.f32.mrb[26].mxu0 }
 0x583   :  { %v783_v57 = vpack.c.bf16 %v779_v56, %v776_v6  ;;  %v1174_v58 = vpop.f32.mrb[27].mxu0 }
 0x585   :  { %1192 = vmatmul.mubr.bf16.vlgmr.msra.gmra.mrb[28].mxu0 %v783_v57 }
 0x658   :  { %v818_v59 = vpop.f32.mrb[28].mxu0 }
 0x659   :  { %v819_v60 = vadd.f32 %v1586_v44, %v818_v59  ;;  %v1193_v61 = vpop.f32.mrb[29].mxu0 }
 0x65a   :  { %v821_v62 = vpop.f32.mrb[30].mxu0 }
 0x65b   :  { %v825_v7 = vmax.f32 %v819_v60, 0.0  ;;  %v822_v63 = vadd.f32 %v1586_v44, %v821_v62  ;;  %v1194_v1 = vpop.f32.mrb[31].mxu0 }
 0x65d   :  { %v826_v11 = vmax.f32 %v822_v63, 0.0  ;;  %v827_v12 = vadd.f32 %v825_v7, %v1590_v52 }
 0x65f   :  { %v828_v8 = vadd.f32 %v826_v11, %v1592_v53  ;;  %v829_v29 = vadd.f32 %v827_v12, %v1590_v52 }
 0x661   :  { %v831_v13 = vpack.c.bf16 %v828_v8, %v827_v12 }
 0x663   :  { %1196 = vmatpush3.bf16.msra.mxu1 %v831_v13 }
 0x664   :  { %1201 = vmatprep.subr.bf16.mxu1 %v1336_v0 }
 0x666   :  { %1198 = vmatmul.mubr.msk.bf16.vlgmr.msra.gmra.mrb[12].mxu1 %vm113_vm1, %v1527_v33  ;;  %v830_v33 = vadd.f32 %v828_v8, %v1592_v53 }
 0x667   :  { %1202 = vmatpush3.bf16.msra.mxu1 %v1525_v32  ;;  %1217 = vmatprep.mubr.msk.bf16.mxu1 %vm1337_vm0, %v1336_v0 }
 0x668   :  { %1203 = vmatprep.subr.bf16.mxu1 %v1336_v0 }
 0x66b   :  { %1204 = vmatpush3.bf16.msra.mxu1 %v1535_v34 }
 0x66c   :  { %1205 = vmatprep.subr.bf16.mxu1 %v1336_v0 }
 0x66f   :  { %1206 = vmatpush3.bf16.msra.mxu1 %v1544_v35  ;;  %v994_v35 = vsel %vm926_vm2, 1.0, %v1336_v0 }
 0x670   :  { %1207 = vmatprep.subr.bf16.mxu1 %v1336_v0 }
 0x673   :  { %1208 = vmatpush3.bf16.msra.mxu1 %v1551_v36  ;;  %v995_v36 = vsel %vm927_vm3, 1.0, %v1336_v0 }
 0x674   :  { %1209 = vmatprep.subr.bf16.mxu1 %v1336_v0 }
 0x677   :  { %1210 = vmatpush3.bf16.msra.mxu1 %v1558_v37 }
 0x678   :  { %1211 = vmatprep.subr.bf16.mxu1 %v1336_v0 }
 0x67b   :  { %1212 = vmatpush3.bf16.msra.mxu1 %v1565_v38 }
 0x67c   :  { %1213 = vmatprep.subr.bf16.mxu1 %v1336_v0 }
 0x67f   :  { %1214 = vmatpush3.bf16.msra.mxu1 %v1572_v3 }
 0x680   :  { %1215 = vmatprep.subr.bf16.mxu1 %v1336_v0 }
 0x683   :  { %1216 = vmatpush3.bf16.msra.mxu1 %v1580_v39 }
 0x739   :  { %v866_v17 = vpop.f32.mrb[12].mxu1 }
 0x73a   :  { %v1199_v18 = vpop.f32.mrb[13].mxu1 }
 0x73b   :  { %v869_v19 = vpop.f32.mrb[14].mxu1 }
 0x73c   :  { %v873_v9 = vpack.c.bf16 %v869_v19, %v866_v17  ;;  %v1200_v10 = vpop.f32.mrb[15].mxu1 }
 0x73e   :  { %1218 = vmatmul.mubr.bf16.vlgmr.msra.gmra.mrb[16].mxu1 %v873_v9 }
 0x811   :  { %v908_v21 = vpop.f32.mrb[16].mxu1 }
 0x812   :  { %v909_v22 = vadd.f32 %v1586_v44, %v908_v21  ;;  %v1219_v23 = vpop.f32.mrb[17].mxu1 }
 0x813   :  { %v911_v26 = vpop.f32.mrb[18].mxu1 }
 0x814   :  { %v915_v2 = vmax.f32 %v909_v22, 0.0  ;;  %v912_v27 = vadd.f32 %v1586_v44, %v911_v26  ;;  %v1220_v28 = vpop.f32.mrb[19].mxu1  ;;  %v945_v44 = vstv %s1222_s0 }
 0x816   :  { %v917_v30 = vadd.f32 %v915_v2, %v827_v12  ;;  %v916_v31 = vmax.f32 %v912_v27, 0.0 }
 0x818   :  { %v919_v32 = vadd.f32 %v917_v30, %v829_v29  ;;  %v918_v34 = vadd.f32 %v916_v31, %v828_v8 }
 0x81a   :  { %v920_v37 = vadd.f32 %v918_v34, %v830_v33  ;;  %v936_v38 = vmul.f32 %v994_v35, %v919_v32 }
 0x81c   :  { %v937_v3 = vmul.f32 %v995_v36, %v920_v37 }
 0x81e   :  { %v938_v39 = vadd.f32 %v937_v3, %v936_v38 }
 0x820   :  { %v939_v40 = vrot.slane %v938_v39, 4 }
 0x822   :  { %v940_v41 = vadd.f32 %v939_v40, %v938_v39 }
 0x824   :  { %v941_v42 = vrot.slane %v940_v41, 2 }
 0x826   :  { %v942_v4 = vadd.f32 %v941_v42, %v940_v41 }
 0x828   :  { %v943_v43 = vrot.slane %v942_v4, 1 }
 0x82a   :  { %v944_v45 = vadd.f32 %v943_v43, %v942_v4 }
 0x82c   :  { %v946_v46 = vmul.f32 %v945_v44, %v944_v45 }
 0x82e   :  { %947 = vst [vmem:[#allocation6] sm:$0x1] %v946_v46 }
 0x82f   :  { %1320 = shalt.err (!%p1317_p12)
}
 0x830   :  { %s1321_s1 = scalar_lea.hbm %s1671_s7, 16 }
 0x831   :  { %p1322_p13 = scmp.ne.s32.totalorder %s1671_s7, %s1321_s1  ;;  %p1325_p0 = scmp.lt.u32.totalorder %s1321_s1, %s1671_s7 }
 0x833   :  { %p1327_p1 = pnand %p1325_p0, %p1322_p13 }
 0x835   :  { %1330 = shalt.err (!%p1327_p1)
}
 0x836   :  { %957 = dma.vmem_to_hbm [thread:$0]  %s955_s27, 16, %s1671_s7, [#allocation5]  }
 0x837   :  { %1333 = dma.done.wait [#allocation5], 16  }
 0x838   :  { %1334 = vsyncadd [#allocation5], 4294967280 }
 0x839   :  { %961 = vsyncpa [#allocation4], 1 }
 0x83a   :  { %962 = vsyncpa [#allocation5], 1 }

</bundles_post_ra>
